<compile_context>
chip_gen: v7x
topology: tpu7x:2x2x1
jax: 0.10.0
libtpu: 0.0.40
codegen_flags: <defaults>
</compile_context>

<pallas_src>
import jax
import jax.numpy as jnp
import numpy as np
from jax.experimental import pallas as pl
from jax.experimental.pallas import tpu as pltpu


def _ris_kernel(x_ref, p_ref, o_ref):
    # x_ref: [B*Cin, HW]  NCHW input with batch+channel flattened into rows
    #                     (free host reshape: no transpose was needed).
    # p_ref: [B*ch, B*ch + B*Cin + 2]  packed parameter slab (static lane slices):
    #          [:, 0:B*ch]             W2bd = kron(I_B, w2.T / HW)
    #          [:, B*ch:B*ch+B*Cin]    W1bd = kron(I_B, w1.T)
    #          [:, B*ch+B*Cin]         b1 column (tiled over batch)
    #          [:, B*ch+B*Cin+1]       b2 column (tiled over batch)
    # o_ref: [B*ch, 1]    pooled conv2 output; the host reshape to [B, ch] is
    #                     free (identical row-major layout).
    bcin, hw = x_ref.shape
    bch = o_ref.shape[0]

    w2bd = p_ref[:, 0:bch]                               # [B*ch, B*ch]
    w1bd = p_ref[:, bch:bch + bcin]                      # [B*ch, B*Cin]
    b1 = p_ref[:, bch + bcin:bch + bcin + 1]             # [B*ch, 1]
    b2 = p_ref[:, bch + bcin + 1:bch + bcin + 2]         # [B*ch, 1]

    # conv1 (1x1) for all batches in a single MXU pass: the batch-block-
    # diagonal weight makes each batch's channels contract only with its own
    # rows of the flattened NCHW input.
    h = jnp.dot(w1bd, x_ref[...], preferred_element_type=jnp.float32)    # [B*ch, HW]
    h = jnp.maximum(h + b1, 0.0)                                          # ReLU

    # Spatial sum on the MXU (ones-matmul) instead of a cross-sublane reduce;
    # the mean's 1/HW factor is already folded into W2bd.
    pooled = jnp.dot(h, jnp.ones((hw, 1), jnp.float32),
                     preferred_element_type=jnp.float32)                  # [B*ch, 1]

    # conv2 hoisted below the (linear) spatial mean:
    #   mean_p(h_p @ w2 + b2) == (sum_p h_p) @ (w2 / HW) + b2
    o_ref[...] = jnp.dot(w2bd, pooled, preferred_element_type=jnp.float32) + b2


def pack_params(params, batch, hw):
    """One-time host-side packing of (w1, b1, w2, b2) into a single slab.

    Layout convention: w1 [Cin, ch], b1 [1, ch], w2 [ch, ch], b2 [1, ch] in
    channels-last matmul form. PyTorch Conv2d stores weight as
    [out, in, 1, 1]; convert with w.squeeze(-1).squeeze(-1).T first.
    """
    w1, b1, w2, b2 = params
    cin, ch = w1.shape
    eye_b = jnp.eye(batch, dtype=jnp.float32)
    w1bd = jnp.kron(eye_b, jnp.transpose(w1).astype(jnp.float32))              # [B*ch, B*Cin]
    # Fold the spatial mean (1/HW) into the conv2 weight (NOT into b2).
    w2bd = jnp.kron(eye_b, jnp.transpose(w2).astype(jnp.float32) / float(hw))  # [B*ch, B*ch]
    b1bd = jnp.tile(jnp.reshape(b1.astype(jnp.float32), (ch, 1)), (batch, 1))  # [B*ch, 1]
    b2bd = jnp.tile(jnp.reshape(b2.astype(jnp.float32), (ch, 1)), (batch, 1))  # [B*ch, 1]
    # Lane-packed slab; W2bd first so the largest matmul operand starts at lane 0.
    return jnp.concatenate([w2bd, w1bd, b1bd, b2bd], axis=1)  # [B*ch, B*ch + B*Cin + 2]


def phase2_ris_init_forward(x_nchw, prev_feature, channel_relay_user_nchw,
                            packed_params):
    """x_nchw: [B, Cx, H, W], prev_feature: [B, in_dim],
    channel_relay_user_nchw: [B, Ccru, H, W] with Cx + Ccru == 2*(N+1),
    packed_params: output of pack_params()."""
    B, Cx, H, W = x_nchw.shape
    Ccru = channel_relay_user_nchw.shape[1]
    Cin = Cx + Ccru
    HW = H * W
    Bch = packed_params.shape[0]
    ch = Bch // B

    # torch.cat((x, channel_relay_user), dim=1): a 4 KB channel concat that XLA
    # fuses under jit; the follow-up reshape to [B*Cin, HW] is free — no
    # NCHW->NHWC transpose is needed because the kernel works in the NCHW
    # orientation directly.
    xcat = jnp.concatenate(
        [x_nchw.astype(jnp.float32), channel_relay_user_nchw.astype(jnp.float32)],
        axis=1,
    )
    x2d = xcat.reshape(B * Cin, HW)

    out_col = pl.pallas_call(
        _ris_kernel,
        out_shape=jax.ShapeDtypeStruct((Bch, 1), jnp.float32),
        grid_spec=pltpu.PrefetchScalarGridSpec(
            num_scalar_prefetch=0,
            # Single grid step: total resident data is ~25 KB (no VMEM or
            # tiling pressure on any generation), so one step avoids all
            # per-step pipeline overhead and fills the MXU once.
            # On v7x, batch K independent per-layer invocations into one call
            # with a leading "parallel" grid axis to use the second TC.
            grid=(1,),
            in_specs=[
                pl.BlockSpec((B * Cin, HW), lambda i: (0, 0)),
                pl.BlockSpec(packed_params.shape, lambda i: (0, 0)),
            ],
            out_specs=pl.BlockSpec((Bch, 1), lambda i: (0, 0)),
        ),
        compiler_params=pltpu.CompilerParams(dimension_semantics=("arbitrary",)),
    )(x2d, packed_params)

    # [B*ch, 1] and [B, ch] share the same row-major layout -> free reshape.
    pooled = out_col.reshape(B, ch)
    # prev_feature is pure pass-through: concatenate in the wrapper (fused by
    # XLA) instead of round-tripping it through VMEM.
    return jnp.concatenate([pooled, prev_feature.astype(jnp.float32)], axis=1)


def _reference(x_nchw, prev_feature, channel_relay_user_nchw, params):
    """Pure-JAX reference matching the PyTorch forward exactly."""
    w1, b1, w2, b2 = params
    xcat = jnp.concatenate([x_nchw, channel_relay_user_nchw], axis=1)
    x_cl = jnp.transpose(xcat, (0, 2, 3, 1)).astype(jnp.float32)  # [B, H, W, Cin]
    h = jnp.maximum(jnp.einsum("bhwc,cd->bhwd", x_cl, w1) + b1[0], 0.0)
    y = jnp.einsum("bhwc,cd->bhwd", h, w2) + b2[0]
    pooled = jnp.mean(jnp.mean(y, axis=2), axis=1)  # mean over W, then H
    return jnp.concatenate([pooled, prev_feature.astype(jnp.float32)], axis=1)


if __name__ == "__main__":
    # Module hyper-params (small, consistent with the forward):
    #   N = 3  -> conv input channels = 2*(N+1) = 8
    #   in_dim = 16, ch = 32; M, L (and L_layer) unused in forward.
    N = 3
    in_dim = 16
    ch = 32
    B, H, W = 2, 8, 8
    Cx = 2 * N        # 6 channels carried by x
    Ccru = 2          # 2 channels carried by channel_relay_user (6 + 2 = 2*(N+1))
    Cin = Cx + Ccru

    key = jax.random.PRNGKey(0)
    k_x, k_cru, k_prev, k_w1, k_b1, k_w2, k_b2 = jax.random.split(key, 7)

    x = jax.random.normal(k_x, (B, Cx, H, W), dtype=jnp.float32)
    channel_relay_user = jax.random.normal(k_cru, (B, Ccru, H, W), dtype=jnp.float32)
    prev_feature = jax.random.normal(k_prev, (B, in_dim), dtype=jnp.float32)

    # Conv2d(Cin, ch, 1) weight is [ch, Cin, 1, 1] in PyTorch; stored here in
    # its channels-last matmul form [Cin, ch] (i.e. w.squeeze(-1).squeeze(-1).T).
    w1 = jax.random.normal(k_w1, (Cin, ch), dtype=jnp.float32) * (1.0 / np.sqrt(Cin))
    b1 = jax.random.normal(k_b1, (1, ch), dtype=jnp.float32) * 0.1
    w2 = jax.random.normal(k_w2, (ch, ch), dtype=jnp.float32) * (1.0 / np.sqrt(ch))
    b2 = jax.random.normal(k_b2, (1, ch), dtype=jnp.float32) * 0.1
    params = (w1, b1, w2, b2)

    # One-time parameter packing (would be done at model-load time in practice).
    packed = jax.block_until_ready(pack_params(params, B, H * W))

    fwd = jax.jit(phase2_ris_init_forward)
    out = fwd(x, prev_feature, channel_relay_user, packed)
    out = jax.block_until_ready(out)

    ref = _reference(x, prev_feature, channel_relay_user, params)
    np.testing.assert_allclose(np.asarray(out), np.asarray(ref), rtol=1e-5, atol=1e-5)
    assert out.shape == (B, ch + in_dim)

    print("KERNEL_OK")
</pallas_src>

<mosaic_0001>
module attributes {stable_mosaic.version = 11 : i64} {
  func.func @_ris_kernel(%arg0: i32, %arg1: memref<16x64xf32, #tpu.memory_space<vmem>>, %arg2: memref<64x82xf32, #tpu.memory_space<vmem>>, %arg3: memref<64x1xf32, #tpu.memory_space<vmem>>) attributes {dimension_semantics = [#tpu.dimension_semantics<arbitrary>], iteration_bounds = array<i64: 1>, scalar_prefetch = 0 : i64, scratch_operands = 0 : i64, tpu.core_type = #tpu.core_type<tc>, window_params = [{pipeline_mode = #tpu.pipeline_mode<synchronous>, transform_indices = @transform_0, window_bounds = array<i64: 16, 64>}, {pipeline_mode = #tpu.pipeline_mode<synchronous>, transform_indices = @transform_1, window_bounds = array<i64: 64, 82>}, {pipeline_mode = #tpu.pipeline_mode<synchronous>, transform_indices = @transform_2, window_bounds = array<i64: 64, 1>}]} {
    %c0 = arith.constant 0 : index
    %c0_0 = arith.constant 0 : index
    %0 = vector.load %arg2[%c0, %c0_0] : memref<64x82xf32, #tpu.memory_space<vmem>>, vector<64x64xf32>
    %c0_1 = arith.constant 0 : index
    %c64 = arith.constant 64 : index
    %1 = vector.load %arg2[%c0_1, %c64] : memref<64x82xf32, #tpu.memory_space<vmem>>, vector<64x16xf32>
    %c0_2 = arith.constant 0 : index
    %c80 = arith.constant 80 : index
    %2 = vector.load %arg2[%c0_2, %c80] : memref<64x82xf32, #tpu.memory_space<vmem>>, vector<64x1xf32>
    %c0_3 = arith.constant 0 : index
    %c81 = arith.constant 81 : index
    %3 = vector.load %arg2[%c0_3, %c81] : memref<64x82xf32, #tpu.memory_space<vmem>>, vector<64x1xf32>
    %c0_4 = arith.constant 0 : index
    %c0_5 = arith.constant 0 : index
    %4 = vector.load %arg1[%c0_4, %c0_5] : memref<16x64xf32, #tpu.memory_space<vmem>>, vector<16x64xf32>
    %cst = arith.constant dense<0.000000e+00> : vector<64x64xf32>
    %5 = tpu.matmul %1, %4, %cst {dimension_numbers = #tpu.dot_dimension_numbers<[1], [0], [0], [1], [0, 0, 1, 1], [], []>} : vector<64x16xf32>, vector<16x64xf32>, vector<64x64xf32> -> vector<64x64xf32>
    %6 = vector.broadcast %2 : vector<64x1xf32> to vector<64x64xf32>
    %7 = arith.addf %5, %6 : vector<64x64xf32>
    %cst_6 = arith.constant 0.000000e+00 : f32
    %8 = vector.broadcast %cst_6 : f32 to vector<64x64xf32>
    %9 = arith.maximumf %7, %8 : vector<64x64xf32>
    %cst_7 = arith.constant 1.000000e+00 : f32
    %10 = vector.broadcast %cst_7 : f32 to vector<64x1xf32>
    %cst_8 = arith.constant dense<0.000000e+00> : vector<64x1xf32>
    %11 = tpu.matmul %9, %10, %cst_8 {dimension_numbers = #tpu.dot_dimension_numbers<[1], [0], [0], [1], [0, 0, 1, 1], [], []>} : vector<64x64xf32>, vector<64x1xf32>, vector<64x1xf32> -> vector<64x1xf32>
    %cst_9 = arith.constant dense<0.000000e+00> : vector<64x1xf32>
    %12 = tpu.matmul %0, %11, %cst_9 {dimension_numbers = #tpu.dot_dimension_numbers<[1], [0], [0], [1], [0, 0, 1, 1], [], []>} : vector<64x64xf32>, vector<64x1xf32>, vector<64x1xf32> -> vector<64x1xf32>
    %13 = arith.addf %12, %3 : vector<64x1xf32>
    %c0_10 = arith.constant 0 : index
    %c0_11 = arith.constant 0 : index
    %14 = vector.load %arg3[%c0_10, %c0_11] : memref<64x1xf32, #tpu.memory_space<vmem>>, vector<64x1xf32>
    tpu.vector_store %arg3[%c0_10, %c0_11], %13 {strides = array<i32>} : memref<64x1xf32, #tpu.memory_space<vmem>>, vector<64x1xf32>,
    return
  }
  func.func @transform_0(%arg0: i32) -> (i32, i32) {
    %c0_i32 = arith.constant 0 : i32
    %c0_i32_0 = arith.constant 0 : i32
    %c0_i32_1 = arith.constant 0 : i32
    return %c0_i32, %c0_i32_0 : i32, i32
  }
  func.func @transform_1(%arg0: i32) -> (i32, i32) {
    %c0_i32 = arith.constant 0 : i32
    %c0_i32_0 = arith.constant 0 : i32
    %c0_i32_1 = arith.constant 0 : i32
    return %c0_i32, %c0_i32_0 : i32, i32
  }
  func.func @transform_2(%arg0: i32) -> (i32, i32) {
    %c0_i32 = arith.constant 0 : i32
    %c0_i32_0 = arith.constant 0 : i32
    %c0_i32_1 = arith.constant 0 : i32
    return %c0_i32, %c0_i32_0 : i32, i32
  }
}

</mosaic_0001>

<bundles_post_ra>
// kernel: phase2_ris_init_forward.1
= control target key start
LH: loop header
LB: loop body
LE: loop exit
PB: predicated region body
PF: predicated region fallthrough
CT: control target
= control target key end

     0   :  { %s667_s13 = smov 64   ;;  %v668_v9 = vmov 80   ;;  %v669_v12 = vmov 1.0|1.0   ;;  %vm77_vm0 = vcmask 130048   ;;  %vm207_vm1 = vcmask 523264   ;;  %s820_s1 = inlined_call_operand.vmem [shape: f32[64,82], index: 1, kind: input, shape index: {}]   ;;  %s821_s0 = inlined_call_operand.vmem [shape: f32[16,64], index: 0, kind: input, shape index: {}]   ;;  %s822_s2 = inlined_call_operand.vmem [shape: f32[64,1], index: 2, kind: output, shape index: {}]  }
   0x1   :  { %v689_v0 = vld [vmem:[%s820_s1] sm:$0xff]  ;;  %v694_v1 = vld [vmem:[%s820_s1 + $0x10] sm:$0xff]  ;;  %v701_v2 = vld [vmem:[%s820_s1 + $0x8] sm:$0xff]  ;;  %666 = vset.pattern.permute.xlu1 %v668_v9  ;;  %665 = vset.pattern.permute.xlu0 %v668_v9  ;;  %vm482_vm2 = vcmask 7168  }
   0x2   :  { %61 = vrot.lane.b32.xlu0 %v689_v0, %s667_s13  ;;  %65 = vrot.lane.b32.xlu1 %v694_v1, %s667_s13  ;;  %v706_v3 = vld [vmem:[%s820_s1 + $0x18] sm:$0xff]  ;;  %v19_v4 = vld [vmem:[%s821_s0] sm:$0xff] }
   0x3   :  { %v20_v5 = vld [vmem:[%s821_s0 + $0x8] sm:$0xff]  ;;  %v719_v7 = vld [vmem:[%s820_s1 + $0x20] sm:$0xff]  ;;  %v731_v10 = vld [vmem:[%s820_s1 + $0x30] sm:$0xff]  ;;  %637 = vmatprep.subr.bf16.mxu1 %v669_v12 }
   0x4   :  { %v633_v6 = vpack.c.bf16 %v20_v5, %v19_v4  ;;  %v724_v8 = vld [vmem:[%s820_s1 + $0x28] sm:$0xff]  ;;  %v736_v11 = vld [vmem:[%s820_s1 + $0x38] sm:$0xff]  ;;  %638 = vmatpush3.bf16.msra.mxu1 %v669_v12  ;;  %s670_s1 = smov 47  }
   0x5   :  { %639 = vmatprep.subr.bf16.mxu1 %v669_v12 }
   0x6   :  { %63 = vrot.lane.b32.xlu0 %v701_v2, %s667_s13  ;;  %67 = vrot.lane.b32.xlu1 %v706_v3, %s667_s13 }
   0x7   :  { %634 = vmatprep.subr.bf16.mxu0 %v633_v6 }
   0x8   :  { %636 = vmatpush3.bf16.msra.mxu0 %v633_v6  ;;  %640 = vmatpush3.bf16.msra.mxu1 %v669_v12 }
   0x9   :  { %641 = vmatprep.subr.bf16.mxu1 %v669_v12 }
   0xa   :  { %69 = vrot.lane.b32.xlu0 %v719_v7, %s667_s13  ;;  %71 = vrot.lane.b32.xlu1 %v724_v8, %s667_s13 }
   0xc   :  { %642 = vmatpush3.bf16.msra.mxu1 %v669_v12 }
   0xd   :  { %643 = vmatprep.subr.bf16.mxu1 %v669_v12 }
   0xe   :  { %73 = vrot.lane.b32.xlu0 %v731_v10, %s667_s13  ;;  %75 = vrot.lane.b32.xlu1 %v736_v11, %s667_s13 }
  0x10   :  { %644 = vmatpush3.bf16.msra.mxu1 %v669_v12 }
  0x12   :  { %28 = vperm.xlu1 %666, %v701_v2   ;;  %23 = vperm.xlu0 %665, %v689_v0  }
  0x16   :  { %33 = vperm.xlu1 %666, %v694_v1   ;;  %38 = vperm.xlu0 %665, %v706_v3  }
  0x1a   :  { %43 = vperm.xlu1 %666, %v719_v7   ;;  %48 = vperm.xlu0 %665, %v724_v8  }
  0x1e   :  { %53 = vperm.xlu1 %666, %v731_v10   ;;  %58 = vperm.xlu0 %665, %v736_v11  }
  0x22   :  { %337 = vrot.lane.b32.xlu1 %v689_v0, %s670_s1  ;;  %339 = vrot.lane.b32.xlu0 %v701_v2, %s670_s1 }
  0x26   :  { %341 = vrot.lane.b32.xlu1 %v694_v1, %s670_s1  ;;  %343 = vrot.lane.b32.xlu0 %v706_v3, %s670_s1 }
  0x2a   :  { %345 = vrot.lane.b32.xlu1 %v719_v7, %s670_s1  ;;  %347 = vrot.lane.b32.xlu0 %v724_v8, %s670_s1 }
  0x2e   :  { %349 = vrot.lane.b32.xlu1 %v731_v10, %s670_s1  ;;  %351 = vrot.lane.b32.xlu0 %v736_v11, %s670_s1 }
  0x74   :  { %v62_v13 = vpop.permute.xlu0 %61  ;;  %v66_v14 = vpop.permute.xlu1 %65 }
  0x75   :  { %565 = vmatprep.mubr.msk.f32.mxu0 %vm77_vm0, %v62_v13 }
  0x78   :  { %v64_v15 = vpop.permute.xlu0 %63  ;;  %v68_v16 = vpop.permute.xlu1 %67 }
  0x79   :  { %566 = vmatmul.mubr.msk.f32.vlgmr.msra.gmra.mrb[0].mxu0 %vm77_vm0, %v64_v15 }
  0x7a   :  { %568 = vmatprep.mubr.msk.f32.mxu0 %vm77_vm0, %v66_v14 }
  0x7c   :  { %v70_v17 = vpop.permute.xlu0 %69  ;;  %v72_v18 = vpop.permute.xlu1 %71 }
  0x7d   :  { %569 = vmatmul.mubr.msk.f32.gmra.mrb[2].mxu0 %vm77_vm0, %v68_v16 }
  0x7e   :  { %571 = vmatprep.mubr.msk.f32.mxu0 %vm77_vm0, %v70_v17 }
  0x80   :  { %v74_v19 = vpop.permute.xlu0 %73  ;;  %v76_v20 = vpop.permute.xlu1 %75 }
  0x81   :  { %572 = vmatmul.mubr.msk.f32.gmra.mrb[4].mxu0 %vm77_vm0, %v72_v18 }
  0x82   :  { %574 = vmatprep.mubr.msk.f32.mxu0 %vm77_vm0, %v74_v19 }
  0x85   :  { %575 = vmatmul.mubr.msk.f32.gmra.mrb[6].mxu0 %vm77_vm0, %v76_v20 }
  0x86   :  { %621 = vmatprep.mubr.msk.f32.mxu0 %vm207_vm1, %v689_v0 }
  0x91   :  { %v24_v21 = vpop.permute.xlu0 %23  ;;  %v29_v22 = vpop.permute.xlu1 %28 }
  0x95   :  { %v39_v23 = vpop.permute.xlu0 %38  ;;  %v34_v25 = vpop.permute.xlu1 %33 }
  0x99   :  { %v49_v34 = vpop.permute.xlu0 %48  ;;  %v44_v36 = vpop.permute.xlu1 %43 }
  0x9d   :  { %v59_v43 = vpop.permute.xlu0 %58  ;;  %v54_v46 = vpop.permute.xlu1 %53 }
  0xa1   :  { %v340_v4 = vpop.permute.xlu0 %339 }
  0xa5   :  { %v344_v5 = vpop.permute.xlu0 %343 }
 0x14c   :  { %v567_v24 = vpop.f32.mrb[0].mxu0 }
 0x14d   :  { %v166_v26 = vadd.f32 %v567_v24, %v29_v22  ;;  %v160_v27 = vpop.f32.mrb[1].mxu0 }
 0x14e   :  { %v161_v28 = vadd.f32 %v160_v27, %v24_v21 }
 0x14f   :  { %v200_v31 = vmax.f32 %v166_v26, 0.0 }
 0x150   :  { %v199_v29 = vmax.f32 %v161_v28, 0.0  ;;  %v570_v30 = vpop.f32.mrb[2].mxu0 }
 0x151   :  { %v176_v32 = vadd.f32 %v570_v30, %v39_v23  ;;  %v170_v33 = vpop.f32.mrb[3].mxu0 }
 0x152   :  { %v171_v35 = vadd.f32 %v170_v33, %v34_v25  ;;  %593 = vmatprep.mubr.msk.f32.mxu1 %vm207_vm1, %v199_v29 }
 0x153   :  { %594 = vmatmul.mubr.msk.f32.vlgmr.msra.gmra.mrb[0].mxu1 %vm207_vm1, %v200_v31  ;;  %v202_v39 = vmax.f32 %v176_v32, 0.0 }
 0x154   :  { %v201_v37 = vmax.f32 %v171_v35, 0.0  ;;  %v573_v38 = vpop.f32.mrb[4].mxu0 }
 0x155   :  { %v186_v40 = vadd.f32 %v573_v38, %v49_v34  ;;  %v180_v41 = vpop.f32.mrb[5].mxu0 }
 0x156   :  { %v181_v42 = vadd.f32 %v180_v41, %v44_v36  ;;  %596 = vmatprep.mubr.msk.f32.mxu1 %vm207_vm1, %v201_v37 }
 0x157   :  { %597 = vmatmul.mubr.msk.f32.gmra.mrb[2].mxu1 %vm207_vm1, %v202_v39  ;;  %v204_v47 = vmax.f32 %v186_v40, 0.0 }
 0x158   :  { %v203_v44 = vmax.f32 %v181_v42, 0.0  ;;  %v576_v45 = vpop.f32.mrb[6].mxu0 }
 0x159   :  { %v196_v48 = vadd.f32 %v576_v45, %v59_v43  ;;  %v190_v49 = vpop.f32.mrb[7].mxu0 }
 0x15a   :  { %v191_v50 = vadd.f32 %v190_v49, %v54_v46  ;;  %599 = vmatprep.mubr.msk.f32.mxu1 %vm207_vm1, %v203_v44 }
 0x15b   :  { %600 = vmatmul.mubr.msk.f32.gmra.mrb[4].mxu1 %vm207_vm1, %v204_v47  ;;  %v206_v52 = vmax.f32 %v196_v48, 0.0 }
 0x15c   :  { %v205_v51 = vmax.f32 %v191_v50, 0.0 }
 0x15e   :  { %602 = vmatprep.mubr.msk.f32.mxu1 %vm207_vm1, %v205_v51 }
 0x15f   :  { %603 = vmatmul.mubr.msk.f32.gmra.mrb[6].mxu1 %vm207_vm1, %v206_v52 }
 0x226   :  { %v595_v53 = vpop.f32.mrb[0].mxu1 }
 0x227   :  { %v298_v54 = vpop.f32.mrb[1].mxu1 }
 0x228   :  { %v645_v55 = vpack.c.bf16 %v595_v53, %v298_v54 }
 0x22a   :  { %v598_v56 = vpop.f32.mrb[2].mxu1  ;;  %646 = vmatprep.subr.bf16.mxu0 %v645_v55 }
 0x22b   :  { %v308_v57 = vpop.f32.mrb[3].mxu1  ;;  %648 = vmatpush3.bf16.msra.mxu0 %v645_v55 }
 0x22c   :  { %v649_v58 = vpack.c.bf16 %v598_v56, %v308_v57 }
 0x22e   :  { %v601_v59 = vpop.f32.mrb[4].mxu1  ;;  %650 = vmatprep.subr.bf16.mxu0 %v649_v58 }
 0x22f   :  { %v318_v60 = vpop.f32.mrb[5].mxu1  ;;  %652 = vmatpush3.bf16.msra.mxu0 %v649_v58 }
 0x230   :  { %v653_v61 = vpack.c.bf16 %v601_v59, %v318_v60 }
 0x232   :  { %v604_v62 = vpop.f32.mrb[6].mxu1  ;;  %654 = vmatprep.subr.bf16.mxu0 %v653_v61 }
 0x233   :  { %v328_v63 = vpop.f32.mrb[7].mxu1  ;;  %656 = vmatpush3.bf16.msra.mxu0 %v653_v61 }
 0x234   :  { %v657_v0 = vpack.c.bf16 %v604_v62, %v328_v63 }
 0x236   :  { %658 = vmatprep.subr.bf16.mxu0 %v657_v0 }
 0x237   :  { %660 = vmatpush3.bf16.msra.mxu0 %v657_v0 }
 0x23a   :  { %622 = vmatmul.mubr.msk.f32.vlgmr.msra.gmra.mrb[8].mxu0 %vm207_vm1, %v701_v2  ;;  %v338_v2 = vpop.permute.xlu1 %337 }
 0x23b   :  { %624 = vmatprep.mubr.msk.f32.mxu0 %vm207_vm1, %v694_v1 }
 0x23e   :  { %625 = vmatmul.mubr.msk.f32.gmra.mrb[10].mxu0 %vm207_vm1, %v706_v3  ;;  %v342_v6 = vpop.permute.xlu1 %341 }
 0x23f   :  { %627 = vmatprep.mubr.msk.f32.mxu0 %vm207_vm1, %v719_v7 }
 0x242   :  { %628 = vmatmul.mubr.msk.f32.gmra.mrb[12].mxu0 %vm207_vm1, %v724_v8  ;;  %v348_v8 = vpop.permute.xlu0 %347  ;;  %v346_v13 = vpop.permute.xlu1 %345 }
 0x243   :  { %630 = vmatprep.mubr.msk.f32.mxu0 %vm207_vm1, %v731_v10 }
 0x246   :  { %631 = vmatmul.mubr.msk.f32.gmra.mrb[14].mxu0 %vm207_vm1, %v736_v11  ;;  %v352_v19 = vpop.permute.xlu0 %351  ;;  %v350_v20 = vpop.permute.xlu1 %349 }
 0x30d   :  { %v623_v1 = vpop.f32.mrb[8].mxu0 }
 0x30e   :  { %v449_v9 = vadd.f32 %v623_v1, %v340_v4  ;;  %v443_v3 = vpop.f32.mrb[9].mxu0 }
 0x30f   :  { %v444_v12 = vadd.f32 %v443_v3, %v338_v2 }
 0x310   :  { %484 = vst.msk [vmem:[%s822_s2 + $0x8] sm:$0xff] %vm482_vm2, %v449_v9 }
 0x311   :  { %483 = vst.msk [vmem:[%s822_s2] sm:$0xff] %vm482_vm2, %v444_v12  ;;  %v626_v7 = vpop.f32.mrb[10].mxu0 }
 0x312   :  { %v459_v10 = vadd.f32 %v626_v7, %v344_v5  ;;  %v453_v11 = vpop.f32.mrb[11].mxu0 }
 0x313   :  { %v454_v14 = vadd.f32 %v453_v11, %v342_v6 }
 0x314   :  { %486 = vst.msk [vmem:[%s822_s2 + $0x18] sm:$0xff] %vm482_vm2, %v459_v10 }
 0x315   :  { %485 = vst.msk [vmem:[%s822_s2 + $0x10] sm:$0xff] %vm482_vm2, %v454_v14  ;;  %v629_v15 = vpop.f32.mrb[12].mxu0 }
 0x316   :  { %v469_v16 = vadd.f32 %v629_v15, %v348_v8  ;;  %v463_v17 = vpop.f32.mrb[13].mxu0 }
 0x317   :  { %v464_v18 = vadd.f32 %v463_v17, %v346_v13 }
 0x318   :  { %488 = vst.msk [vmem:[%s822_s2 + $0x28] sm:$0xff] %vm482_vm2, %v469_v16 }
 0x319   :  { %487 = vst.msk [vmem:[%s822_s2 + $0x20] sm:$0xff] %vm482_vm2, %v464_v18  ;;  %v632_v21 = vpop.f32.mrb[14].mxu0 }
 0x31a   :  { %v479_v22 = vadd.f32 %v632_v21, %v352_v19  ;;  %v473_v23 = vpop.f32.mrb[15].mxu0 }
 0x31b   :  { %v474_v24 = vadd.f32 %v473_v23, %v350_v20 }
 0x31c   :  { %490 = vst.msk [vmem:[%s822_s2 + $0x38] sm:$0xff] %vm482_vm2, %v479_v22 }
 0x31d   :  { %489 = vst.msk [vmem:[%s822_s2 + $0x30] sm:$0xff] %vm482_vm2, %v474_v24 }

</bundles_post_ra>
